<compile_context>
chip_gen: v7x
topology: tpu7x:2x2x1
jax: 0.10.0
libtpu: 0.0.40
codegen_flags: <defaults>
</compile_context>

<pallas_src>
import functools

import jax
import jax.numpy as jnp
from jax.experimental import pallas as pl
from jax.experimental.pallas import tpu as pltpu

_SUBLANE = 8  # f32 sublane alignment for the batch (second-to-last) dim


def _round_up(n, m):
    return ((n + m - 1) // m) * m


def _mlp_kernel(*refs, n_layers, activation):
    """Fused MLP forward. refs = (x, w0, b0, w1, b1, ..., w_{L-1}, b_{L-1}, out).

    x:   (Bp, D0)        VMEM
    w_i: (D_i, D_{i+1})  VMEM  (transposed vs nn.Linear so we do x @ W)
    b_i: (1, D_{i+1})    VMEM
    out: (Bp, D_L)       VMEM
    All compute stays in f32; MXU accumulates in f32.
    """
    x_ref = refs[0]
    o_ref = refs[-1]

    h = x_ref[...]
    for i in range(n_layers):
        w_ref = refs[1 + 2 * i]
        b_ref = refs[2 + 2 * i]
        # bias folded into the matmul result (single VPU add)
        h = b_ref[...] + jnp.dot(h, w_ref[...], preferred_element_type=jnp.float32)
        if i < n_layers - 1:  # activation on all but the last layer
            if activation == "relu":
                h = jnp.maximum(h, 0.0)
            elif activation == "sigmoid":
                h = jax.nn.sigmoid(h)   # EUP path, effectively free here
            elif activation == "tanh":
                h = jnp.tanh(h)
            else:
                raise ValueError(f"unsupported activation: {activation}")
    o_ref[...] = h.astype(o_ref.dtype)


def simple_nn_forward(x, params, activation="relu"):
    """Forward pass matching SimpleNN: activation on all layers except the last.

    x: (B, input_size) f32
    params: list of (W (in, out), b (1, out)) f32  -- W is transposed vs. nn.Linear.
    """
    B, _ = x.shape
    n_layers = len(params)
    out_dim = params[-1][0].shape[1]

    # Only the batch (sublane) axis is padded, and only when B % 8 != 0.
    # Padded rows are sliced off below so they never affect real outputs.
    b_p = _round_up(B, _SUBLANE)
    if b_p != B:
        x = jnp.pad(x, ((0, b_p - B), (0, 0)))

    flat_inputs = [x]
    for (w, b) in params:
        flat_inputs.append(w)
        flat_inputs.append(b)

    kernel = functools.partial(_mlp_kernel, n_layers=n_layers, activation=activation)

    out = pl.pallas_call(
        kernel,
        out_shape=jax.ShapeDtypeStruct((b_p, out_dim), jnp.float32),
        in_specs=[pl.BlockSpec(memory_space=pltpu.MemorySpace.VMEM)] * len(flat_inputs),
        out_specs=pl.BlockSpec(memory_space=pltpu.MemorySpace.VMEM),
        compiler_params=pltpu.CompilerParams(vmem_limit_bytes=32 * 1024 * 1024),
    )(*flat_inputs)

    if b_p != B:
        out = out[:B]
    return out


def init_params(key, input_size, hidden_sizes, output_size):
    """Deterministic init mimicking nn.Linear's U(-1/sqrt(fan_in), 1/sqrt(fan_in))."""
    layer_sizes = [input_size] + list(hidden_sizes) + [output_size]
    params = []
    for i in range(len(layer_sizes) - 1):
        fan_in, fan_out = layer_sizes[i], layer_sizes[i + 1]
        key, wk, bk = jax.random.split(key, 3)
        bound = 1.0 / (fan_in ** 0.5)
        # stored as (in, out) so the kernel does x @ W directly
        w = jax.random.uniform(wk, (fan_in, fan_out), jnp.float32, -bound, bound)
        b = jax.random.uniform(bk, (1, fan_out), jnp.float32, -bound, bound)
        params.append((w, b))
    return params


def reference_forward(x, params, activation="relu"):
    """Plain-JAX reference for correctness checking."""
    act_fn = {"relu": lambda v: jnp.maximum(v, 0.0),
              "sigmoid": jax.nn.sigmoid,
              "tanh": jnp.tanh}[activation]
    n_layers = len(params)
    for i, (w, b) in enumerate(params):
        x = x @ w + b
        if i < n_layers - 1:
            x = act_fn(x)
    return x


if __name__ == "__main__":
    key = jax.random.PRNGKey(0)

    # SimpleNN(input_size=16, hidden_sizes=[32, 32], output_size=8, activation='relu')
    input_size, hidden_sizes, output_size = 16, [32, 32], 8
    batch = 8

    key, pkey, xkey = jax.random.split(key, 3)
    params = init_params(pkey, input_size, hidden_sizes, output_size)
    x = jax.random.normal(xkey, (batch, input_size), jnp.float32)

    # jit the whole forward: one dispatched pallas_call per step, no per-call
    # pad/slice traffic (batch already a multiple of 8 here).
    fwd = jax.jit(simple_nn_forward, static_argnames=("activation",))

    out = fwd(x, params, activation="relu")
    out = jax.block_until_ready(out)

    ref = reference_forward(x, params, activation="relu")
    assert out.shape == (batch, output_size)
    assert jnp.allclose(out, ref, atol=1e-5, rtol=1e-5), "mismatch vs reference"

    print("KERNEL_OK")
</pallas_src>

<mosaic_0001>
module attributes {stable_mosaic.version = 11 : i64} {
  func.func @_mlp_kernel(%arg0: memref<8x16xf32, #tpu.memory_space<vmem>>, %arg1: memref<16x32xf32, #tpu.memory_space<vmem>>, %arg2: memref<1x32xf32, #tpu.memory_space<vmem>>, %arg3: memref<32x32xf32, #tpu.memory_space<vmem>>, %arg4: memref<1x32xf32, #tpu.memory_space<vmem>>, %arg5: memref<32x8xf32, #tpu.memory_space<vmem>>, %arg6: memref<1x8xf32, #tpu.memory_space<vmem>>, %arg7: memref<8x8xf32, #tpu.memory_space<vmem>>) attributes {dimension_semantics = [], scalar_prefetch = 0 : i64, scratch_operands = 0 : i64, tpu.core_type = #tpu.core_type<tc>} {
    %c0 = arith.constant 0 : index
    %c0_0 = arith.constant 0 : index
    %0 = vector.load %arg0[%c0, %c0_0] : memref<8x16xf32, #tpu.memory_space<vmem>>, vector<8x16xf32>
    %c0_1 = arith.constant 0 : index
    %c0_2 = arith.constant 0 : index
    %1 = vector.load %arg2[%c0_1, %c0_2] : memref<1x32xf32, #tpu.memory_space<vmem>>, vector<1x32xf32>
    %c0_3 = arith.constant 0 : index
    %c0_4 = arith.constant 0 : index
    %2 = vector.load %arg1[%c0_3, %c0_4] : memref<16x32xf32, #tpu.memory_space<vmem>>, vector<16x32xf32>
    %cst = arith.constant dense<0.000000e+00> : vector<8x32xf32>
    %3 = tpu.matmul %0, %2, %cst {dimension_numbers = #tpu.dot_dimension_numbers<[1], [0], [0], [1], [0, 0, 1, 1], [], []>} : vector<8x16xf32>, vector<16x32xf32>, vector<8x32xf32> -> vector<8x32xf32>
    %4 = vector.broadcast %1 : vector<1x32xf32> to vector<8x32xf32>
    %5 = arith.addf %4, %3 : vector<8x32xf32>
    %cst_5 = arith.constant 0.000000e+00 : f32
    %6 = vector.broadcast %cst_5 : f32 to vector<8x32xf32>
    %7 = arith.maximumf %5, %6 : vector<8x32xf32>
    %c0_6 = arith.constant 0 : index
    %c0_7 = arith.constant 0 : index
    %8 = vector.load %arg4[%c0_6, %c0_7] : memref<1x32xf32, #tpu.memory_space<vmem>>, vector<1x32xf32>
    %c0_8 = arith.constant 0 : index
    %c0_9 = arith.constant 0 : index
    %9 = vector.load %arg3[%c0_8, %c0_9] : memref<32x32xf32, #tpu.memory_space<vmem>>, vector<32x32xf32>
    %cst_10 = arith.constant dense<0.000000e+00> : vector<8x32xf32>
    %10 = tpu.matmul %7, %9, %cst_10 {dimension_numbers = #tpu.dot_dimension_numbers<[1], [0], [0], [1], [0, 0, 1, 1], [], []>} : vector<8x32xf32>, vector<32x32xf32>, vector<8x32xf32> -> vector<8x32xf32>
    %11 = vector.broadcast %8 : vector<1x32xf32> to vector<8x32xf32>
    %12 = arith.addf %11, %10 : vector<8x32xf32>
    %cst_11 = arith.constant 0.000000e+00 : f32
    %13 = vector.broadcast %cst_11 : f32 to vector<8x32xf32>
    %14 = arith.maximumf %12, %13 : vector<8x32xf32>
    %c0_12 = arith.constant 0 : index
    %c0_13 = arith.constant 0 : index
    %15 = vector.load %arg6[%c0_12, %c0_13] : memref<1x8xf32, #tpu.memory_space<vmem>>, vector<1x8xf32>
    %c0_14 = arith.constant 0 : index
    %c0_15 = arith.constant 0 : index
    %16 = vector.load %arg5[%c0_14, %c0_15] : memref<32x8xf32, #tpu.memory_space<vmem>>, vector<32x8xf32>
    %cst_16 = arith.constant dense<0.000000e+00> : vector<8x8xf32>
    %17 = tpu.matmul %14, %16, %cst_16 {dimension_numbers = #tpu.dot_dimension_numbers<[1], [0], [0], [1], [0, 0, 1, 1], [], []>} : vector<8x32xf32>, vector<32x8xf32>, vector<8x8xf32> -> vector<8x8xf32>
    %18 = vector.broadcast %15 : vector<1x8xf32> to vector<8x8xf32>
    %19 = arith.addf %18, %17 : vector<8x8xf32>
    %c0_17 = arith.constant 0 : index
    %c0_18 = arith.constant 0 : index
    %20 = vector.load %arg7[%c0_17, %c0_18] : memref<8x8xf32, #tpu.memory_space<vmem>>, vector<8x8xf32>
    tpu.vector_store %arg7[%c0_17, %c0_18], %19 {strides = array<i32>} : memref<8x8xf32, #tpu.memory_space<vmem>>, vector<8x8xf32>,
    return
  }
}

</mosaic_0001>

<bundles_post_ra>
// kernel: simple_nn_forward.1
= control target key start
LH: loop header
LB: loop body
LE: loop exit
PB: predicated region body
PF: predicated region fallthrough
CT: control target
= control target key end

     0   :  { %12 = vsyncpa [#allocation3], 0  ;;  %s541_s0 = inlined_call_operand.hbm [shape: f32[8,16], index: 0, kind: input, shape index: {}]   ;;  %s542_s1 = inlined_call_operand.vmem [shape: f32[16,32], index: 1, kind: input, shape index: {}]   ;;  %s543_s2 = inlined_call_operand.vmem [shape: f32[1,32], index: 2, kind: input, shape index: {}]   ;;  %s544_s3 = inlined_call_operand.vmem [shape: f32[32,32], index: 3, kind: input, shape index: {}]   ;;  %s545_s4 = inlined_call_operand.vmem [shape: f32[1,32], index: 4, kind: input, shape index: {}]   ;;  %s546_s5 = inlined_call_operand.vmem [shape: f32[32,8], index: 5, kind: input, shape index: {}]   ;;  %s547_s6 = inlined_call_operand.vmem [shape: f32[1,8], index: 6, kind: input, shape index: {}]   ;;  %s548_s7 = inlined_call_operand.hbm [shape: f32[8,8], index: 7, kind: output, shape index: {}]  }
   0x1   :  { %13 = vsyncpa [#allocation4], 0  ;;  %s430_s24 = smov [#allocation2]   ;;  %s382_s28 = scalar_lea.hbm %s541_s0, 128 }
   0x2   :  { %s20_s25 = sshll.u32 %s430_s24, 4  ;;  %p383_p0 = scmp.ne.s32.totalorder %s541_s0, %s382_s28  ;;  %s21_s25 = int_to_ptr.vmem [resolvable:$true] %s20_s25 }
   0x3   :  { %p386_p1 = scmp.lt.u32.totalorder %s382_s28, %s541_s0 }
   0x5   :  { %p388_p2 = pnand %p386_p1, %p383_p0 }
   0x7   :  { %391 = shalt.err (!%p388_p2)
}
   0x8   :  { %s392_s10 = scalar_lea.vmem %s21_s25, 128  ;;  %p397_p4 = scmp.lt.s32.totalorder %s21_s25, %s21_s25 }
   0x9   :  { %p393_p3 = scmp.ne.s32.totalorder %s21_s25, %s392_s10  ;;  %p398_p5 = scmp.lt.s32.totalorder %s392_s10, %s392_s10 }
   0xb   :  { %p399_p6 = por %p398_p5, %p397_p4 }
   0xd   :  { %p400_p7 = pnand %p399_p6, %p393_p3 }
   0xf   :  { %403 = shalt.err (!%p400_p7)
}
  0x10   :  { %23 = dma.hbm_to_vmem [thread:$0]  %s541_s0, 128, %s21_s25, [#allocation3]  }
  0x11   :  { %426 = dma.done.wait [#allocation3], 128  }
  0x12   :  { %427 = vsyncadd [#allocation3], 4294967168  ;;  %v431_v0 = vmov 0.0|0.0   ;;  %vm432_vm0 = vmmov 0   ;;  %v433_v1 = vmov 0.0   ;;  %v41_v2 = vld [vmem:[%s542_s1] sm:$0xff] }
  0x13   :  { %362 = vmatprep.subr.bf16.mxu0 %v431_v0  ;;  %337 = vmatprep.mubr.msk.f32.mxu0 %vm432_vm0, %v433_v1  ;;  %v42_v3 = vld [vmem:[%s542_s1 + $0x8] sm:$0xff]  ;;  %v126_v5 = vld [vmem:[%s544_s3] sm:$0xff]  ;;  %vm43_vm1 = vcmask 130048   ;;  %v128_v9 = vld [vmem:[%s544_s3 + $0x10] sm:$0xff]  ;;  %vm130_vm2 = vcmask 261120   ;;  %s434_s12 = smov [#allocation5]  }
  0x14   :  { %365 = vmatprep.subr.bf16.mxu1 %v431_v0  ;;  %348 = vmatprep.mubr.msk.f32.mxu1 %vm432_vm0, %v433_v1  ;;  %v363_v4 = vpack.c.bf16 %v42_v3, %v41_v2  ;;  %v127_v6 = vld [vmem:[%s544_s3 + $0x8] sm:$0xff]  ;;  %v39_v8 = vld [vmem:[#allocation2] sm:$0xff]  ;;  %v129_v10 = vld [vmem:[%s544_s3 + $0x18] sm:$0xff]  ;;  %s305_s13 = sshll.u32 %s434_s12, 4  ;;  %vm297_vm3 = vcmask 64512   ;;  %s306_s13 = int_to_ptr.vmem [resolvable:$true] %s305_s13 }
  0x15   :  { %v366_v7 = vpack.c.bf16 %v127_v6, %v126_v5  ;;  %v369_v11 = vpack.c.bf16 %v129_v10, %v128_v9  ;;  %v213_v12 = vld [vmem:[%s546_s5] sm:$0xff]  ;;  %v214_v13 = vld [vmem:[%s546_s5 + $0x8] sm:$0xff]  ;;  %v215_v20 = vld [vmem:[%s546_s5 + $0x10] sm:$0xff]  ;;  %p409_p9 = scmp.lt.s32.totalorder %s306_s13, %s306_s13 }
  0x16   :  { %364 = vmatpush3.bf16.msra.mxu0 %v363_v4  ;;  %v372_v14 = vpack.c.bf16 %v214_v13, %v213_v12  ;;  %v315_v15 = vld [vmem:[%s543_s2] ss:$0 sm:$0xff]  ;;  %v216_v21 = vld [vmem:[%s546_s5 + $0x18] sm:$0xff]  ;;  %s404_s5 = scalar_lea.vmem %s306_s13, 128 }
  0x17   :  { %367 = vmatpush3.bf16.msra.mxu1 %v366_v7  ;;  %371 = vmatprep.subr.bf16.mxu0 %v431_v0  ;;  %v375_v22 = vpack.c.bf16 %v216_v21, %v215_v20  ;;  %v317_v23 = vld [vmem:[%s545_s4] ss:$0 sm:$0xff]  ;;  %p405_p8 = scmp.ne.s32.totalorder %s306_s13, %s404_s5  ;;  %p410_p10 = scmp.lt.s32.totalorder %s404_s5, %s404_s5 }
  0x18   :  { %368 = vmatprep.subr.bf16.mxu1 %v431_v0  ;;  %v319_v28 = vld [vmem:[%s547_s6] ss:$0 sm:$0xff] }
  0x19   :  { %338 = vmatmul.mubr.msk.f32.vlgmr.msra.gmra.mrb[0].mxu0 %vm43_vm1, %v39_v8  ;;  %p411_p11 = por %p410_p10, %p409_p9 }
  0x1a   :  { %359 = vmatprep.mubr.msk.f32.mxu0 %vm432_vm0, %v433_v1  ;;  %373 = vmatpush3.bf16.msra.mxu0 %v372_v14 }
  0x1b   :  { %370 = vmatpush3.bf16.msra.mxu1 %v369_v11  ;;  %374 = vmatprep.subr.bf16.mxu0 %v431_v0  ;;  %p412_p12 = pnand %p411_p11, %p405_p8 }
  0x1e   :  { %376 = vmatpush3.bf16.msra.mxu0 %v375_v22 }
  0xec   :  { %v113_v16 = vpop.f32.mrb[0].mxu0 }
  0xed   :  { %v123_v17 = vadd.f32 %v315_v15, %v113_v16  ;;  %v339_v18 = vpop.f32.mrb[1].mxu0 }
  0xef   :  { %v124_v19 = vmax.f32 %v123_v17, 0.0 }
  0xf1   :  { %349 = vmatmul.mubr.msk.f32.vlgmr.msra.gmra.mrb[0].mxu1 %vm130_vm2, %v124_v19 }
 0x1c4   :  { %v200_v24 = vpop.f32.mrb[0].mxu1 }
 0x1c5   :  { %v210_v25 = vadd.f32 %v317_v23, %v200_v24  ;;  %v350_v26 = vpop.f32.mrb[1].mxu1 }
 0x1c7   :  { %v211_v27 = vmax.f32 %v210_v25, 0.0 }
 0x1c9   :  { %360 = vmatmul.mubr.msk.f32.vlgmr.msra.gmra.mrb[2].mxu0 %vm130_vm2, %v211_v27 }
 0x29c   :  { %v286_v29 = vpop.f32.mrb[2].mxu0 }
 0x29d   :  { %v296_v30 = vadd.f32 %v319_v28, %v286_v29  ;;  %v361_v31 = vpop.f32.mrb[3].mxu0 }
 0x29f   :  { %298 = vst.msk [vmem:[#allocation5] sm:$0xff] %vm297_vm3, %v296_v30 }
 0x2a0   :  { %415 = shalt.err (!%p412_p12)
}
 0x2a1   :  { %s416_s15 = scalar_lea.hbm %s548_s7, 128 }
 0x2a2   :  { %p417_p13 = scmp.ne.s32.totalorder %s548_s7, %s416_s15  ;;  %p420_p0 = scmp.lt.u32.totalorder %s416_s15, %s548_s7 }
 0x2a4   :  { %p422_p1 = pnand %p420_p0, %p417_p13 }
 0x2a6   :  { %425 = shalt.err (!%p422_p1)
}
 0x2a7   :  { %308 = dma.vmem_to_hbm [thread:$0]  %s306_s13, 128, %s548_s7, [#allocation4]  }
 0x2a8   :  { %428 = dma.done.wait [#allocation4], 128  }
 0x2a9   :  { %429 = vsyncadd [#allocation4], 4294967168 }
 0x2aa   :  { %312 = vsyncpa [#allocation3], 1 }
 0x2ab   :  { %313 = vsyncpa [#allocation4], 1 }

</bundles_post_ra>
